<compile_context>
chip_gen: v7x
topology: tpu7x:2x2x1
jax: 0.10.0
libtpu: 0.0.40
codegen_flags: <defaults>
</compile_context>

<pallas_src>
import jax
import jax.numpy as jnp
from jax.experimental import pallas as pl
from jax.experimental.pallas import tpu as pltpu

BN_EPS = 1e-5
MAX_TILE_B = 2048  # batch tile upper bound (multiple of 8); amortizes per-step overhead


def _round_up(x, m):
    return (x + m - 1) // m * m


# ---------------------------------------------------------------------------
# Kernel: one batch tile of the fully folded MLP.
# ---------------------------------------------------------------------------
def tabular_mlp_kernel(xcat_ref, xcont_ref,
                       mcat_ref, w1c_ref, b1_ref,
                       w2_ref, b2_ref, w3_ref, b3_ref,
                       out_ref):
    tb = xcat_ref.shape[0]
    n_cat_feats = xcat_ref.shape[1]
    ncat_total = mcat_ref.shape[0]

    # Combined one-hot over all categorical features (indices already carry
    # per-feature offsets).  Accumulate in f32 (VPU-safe on v5e), cast once
    # to bf16 for the MXU.
    iota = jax.lax.broadcasted_iota(jnp.int32, (tb, ncat_total), 1)
    onehot = jnp.zeros((tb, ncat_total), jnp.float32)
    for f in range(n_cat_feats):  # static, tiny loop (number of cat features)
        onehot = onehot + (iota == xcat_ref[:, f:f + 1]).astype(jnp.float32)

    # Layer 1: embedding lookup as onehot @ M_cat  +  bn_cont-folded continuous part.
    h = jnp.dot(onehot.astype(jnp.bfloat16), mcat_ref[...],
                preferred_element_type=jnp.float32)
    h = h + jnp.dot(xcont_ref[...].astype(jnp.bfloat16), w1c_ref[...],
                    preferred_element_type=jnp.float32)
    h = jnp.maximum(h + b1_ref[...], 0.0)            # ReLU (emb_drop / dropout = identity)

    # Layer 2 (bn1 folded into W2/b2).
    h = jnp.dot(h.astype(jnp.bfloat16), w2_ref[...],
                preferred_element_type=jnp.float32) + b2_ref[...]
    h = jnp.maximum(h, 0.0)

    # Output layer (bn2 folded into W3/b3).
    out_ref[...] = (jnp.dot(h.astype(jnp.bfloat16), w3_ref[...],
                            preferred_element_type=jnp.float32) + b3_ref[...])


# ---------------------------------------------------------------------------
# Parameters: raw (PyTorch-like) -> folded kernel parameters.
# ---------------------------------------------------------------------------
def make_raw_params(key, emb_szs, n_cont, out_sz, layers):
    """Mirror the PyTorch module's parameter shapes (weights pre-transposed to x @ W)."""
    assert len(layers) == 2, "kernel written for two hidden layers"
    n_emb = sum(nf for _, nf in emb_szs)
    keys = iter(jax.random.split(key, 32))

    def linear(k, n_in, n_out):
        bound = 1.0 / float(n_in) ** 0.5
        kw, kb = jax.random.split(k)
        w = jax.random.uniform(kw, (n_in, n_out), jnp.float32, -bound, bound)
        b = jax.random.uniform(kb, (1, n_out), jnp.float32, -bound, bound)
        return w, b

    def batchnorm(k, n):
        # Non-trivial running stats / affine so the BN fold is actually exercised.
        kg, kb, km, kv = jax.random.split(k, 4)
        gamma = jax.random.uniform(kg, (n,), jnp.float32, 0.5, 1.5)
        beta = 0.1 * jax.random.normal(kb, (n,), jnp.float32)
        mean = 0.1 * jax.random.normal(km, (n,), jnp.float32)
        var = jax.random.uniform(kv, (n,), jnp.float32, 0.5, 1.5)
        return gamma, beta, mean, var

    p = {}
    p["emb"] = [jax.random.normal(next(keys), (ni, nf), jnp.float32)
                for ni, nf in emb_szs]
    p["bn_cont"] = batchnorm(next(keys), n_cont)
    p["w1"], p["b1"] = linear(next(keys), n_emb + n_cont, layers[0])
    p["bn1"] = batchnorm(next(keys), layers[0])
    p["w2"], p["b2"] = linear(next(keys), layers[0], layers[1])
    p["bn2"] = batchnorm(next(keys), layers[1])
    p["w3"], p["b3"] = linear(next(keys), layers[1], out_sz)
    return p


def _bn_scale_shift(bn):
    g, b, m, v = bn
    s = g * jax.lax.rsqrt(v + BN_EPS)
    return s, b - m * s


def prepare_params(raw, emb_szs, n_cont):
    """Fold BNs and embedding tables into the Linears; cast MXU operands to bf16."""
    n_emb = sum(nf for _, nf in emb_szs)
    w1 = raw["w1"]
    w1_emb, w1_cont = w1[:n_emb], w1[n_emb:]

    # Fold each embedding table into its slice of W1: M_i = E_i @ W1_rows_i.
    m_cat, offsets, off, row = [], [], 0, 0
    for (ni, nf), tbl in zip(emb_szs, raw["emb"]):
        m_cat.append(tbl @ w1_emb[row:row + nf])
        offsets.append(off)
        off += ni
        row += nf
    m_cat = jnp.concatenate(m_cat, axis=0)            # (sum ni, L1)

    # bn_cont (eval affine) folded into continuous rows of W1 and b1.
    sc, tc = _bn_scale_shift(raw["bn_cont"])
    w1c = sc[:, None] * w1_cont
    b1 = raw["b1"] + tc[None, :] @ w1_cont

    # bn1 -> W2/b2, bn2 -> W3/b3.
    s1, t1 = _bn_scale_shift(raw["bn1"])
    w2 = s1[:, None] * raw["w2"]
    b2 = raw["b2"] + t1[None, :] @ raw["w2"]
    s2, t2 = _bn_scale_shift(raw["bn2"])
    w3 = s2[:, None] * raw["w3"]
    b3 = raw["b3"] + t2[None, :] @ raw["w3"]

    return {
        "offsets": jnp.asarray(offsets, jnp.int32),
        "m_cat": m_cat.astype(jnp.bfloat16),
        "w1c": w1c.astype(jnp.bfloat16),
        "b1": b1.astype(jnp.float32),
        "w2": w2.astype(jnp.bfloat16),
        "b2": b2.astype(jnp.float32),
        "w3": w3.astype(jnp.bfloat16),
        "b3": b3.astype(jnp.float32),
    }


# ---------------------------------------------------------------------------
# Wrapper: batch-tiled pallas_call.
# ---------------------------------------------------------------------------
def tabular_forward(prep, x_cat, x_cont, out_sz, max_tile_b=MAX_TILE_B):
    B = x_cat.shape[0]
    n_cat_feats = x_cat.shape[1]
    n_cont = x_cont.shape[1]

    tile_b = min(max_tile_b, _round_up(B, 8))
    b_pad = _round_up(B, tile_b)
    grid = (b_pad // tile_b,)

    gidx = x_cat.astype(jnp.int32) + prep["offsets"][None, :]
    x_cont = x_cont.astype(jnp.float32)
    if b_pad != B:
        gidx = jnp.pad(gidx, ((0, b_pad - B), (0, 0)))
        x_cont = jnp.pad(x_cont, ((0, b_pad - B), (0, 0)))

    def batch_spec(feat):
        return pl.BlockSpec((tile_b, feat), lambda i: (i, 0))

    def resident_spec(arr):
        # Weights/biases stay VMEM-resident across all grid steps.
        return pl.BlockSpec(arr.shape, lambda i: (0, 0))

    weights = (prep["m_cat"], prep["w1c"], prep["b1"],
               prep["w2"], prep["b2"], prep["w3"], prep["b3"])

    out = pl.pallas_call(
        tabular_mlp_kernel,
        out_shape=jax.ShapeDtypeStruct((b_pad, out_sz), jnp.float32),
        grid=grid,
        in_specs=[batch_spec(n_cat_feats), batch_spec(n_cont)]
                 + [resident_spec(w) for w in weights],
        out_specs=batch_spec(out_sz),
        compiler_params=pltpu.CompilerParams(
            dimension_semantics=("parallel",)),   # v7x: shard batch tiles over both TCs
    )(gidx, x_cont, *weights)
    return out[:B]


# ---------------------------------------------------------------------------
# References.
# ---------------------------------------------------------------------------
def reference_module_f32(raw, x_cat, x_cont):
    """Pure-JAX f32 reference with the original (unfolded) module math, eval mode."""
    embs = [raw["emb"][i][x_cat[:, i]] for i in range(x_cat.shape[1])]
    x = jnp.concatenate(embs, axis=1)
    g, b, m, v = raw["bn_cont"]
    xc = (x_cont - m) * jax.lax.rsqrt(v + BN_EPS) * g + b
    x = jnp.concatenate([x, xc], axis=1)
    h = jnp.maximum(x @ raw["w1"] + raw["b1"], 0.0)
    g, b, m, v = raw["bn1"]
    h = (h - m) * jax.lax.rsqrt(v + BN_EPS) * g + b
    h = jnp.maximum(h @ raw["w2"] + raw["b2"], 0.0)
    g, b, m, v = raw["bn2"]
    h = (h - m) * jax.lax.rsqrt(v + BN_EPS) * g + b
    return h @ raw["w3"] + raw["b3"]


def reference_kernel_math(prep, x_cat, x_cont):
    """Emulates the kernel's exact folded / bf16-MXU math for a tight comparison."""
    gidx = x_cat.astype(jnp.int32) + prep["offsets"][None, :]
    ncat_total = prep["m_cat"].shape[0]
    onehot = jax.nn.one_hot(gidx, ncat_total, dtype=jnp.float32).sum(axis=1)

    def dot(a, w):
        return jnp.dot(a.astype(jnp.bfloat16), w, preferred_element_type=jnp.float32)

    h = dot(onehot, prep["m_cat"]) + dot(x_cont, prep["w1c"]) + prep["b1"]
    h = jnp.maximum(h, 0.0)
    h = jnp.maximum(dot(h, prep["w2"]) + prep["b2"], 0.0)
    return dot(h, prep["w3"]) + prep["b3"]


if __name__ == "__main__":
    # Small config: 2 categorical vars (10->4), (7->3); 4 continuous vars;
    # hidden layers [32, 16]; output size 2; batch 8.
    emb_szs = [(10, 4), (7, 3)]
    n_cont = 4
    out_sz = 2
    layers = [32, 16]
    B = 8

    key = jax.random.PRNGKey(0)
    kp, kcat0, kcat1, kcont = jax.random.split(key, 4)
    raw = make_raw_params(kp, emb_szs, n_cont, out_sz, layers)
    prep = prepare_params(raw, emb_szs, n_cont)

    x_cat = jnp.stack(
        [jax.random.randint(kcat0, (B,), 0, emb_szs[0][0], dtype=jnp.int32),
         jax.random.randint(kcat1, (B,), 0, emb_szs[1][0], dtype=jnp.int32)],
        axis=1)                                   # (B, 2) int32
    x_cont = jax.random.normal(kcont, (B, n_cont), jnp.float32)

    out = jax.block_until_ready(tabular_forward(prep, x_cat, x_cont, out_sz))
    assert out.shape == (B, out_sz)

    ref_emu = reference_kernel_math(prep, x_cat, x_cont)   # same folded bf16 math
    ref_f32 = reference_module_f32(raw, x_cat, x_cont)     # original module, f32
    assert jnp.allclose(out, ref_emu, atol=2e-3, rtol=2e-3), \
        float(jnp.max(jnp.abs(out - ref_emu)))
    assert jnp.allclose(out, ref_f32, atol=5e-2, rtol=5e-2), \
        float(jnp.max(jnp.abs(out - ref_f32)))
    print("KERNEL_OK")
</pallas_src>

<mosaic_0001>
module attributes {stable_mosaic.version = 11 : i64} {
  func.func @tabular_mlp_kernel(%arg0: i32, %arg1: memref<8x2xi32, #tpu.memory_space<vmem>>, %arg2: memref<8x4xf32, #tpu.memory_space<vmem>>, %arg3: memref<17x32xbf16, #tpu.memory_space<vmem>>, %arg4: memref<4x32xbf16, #tpu.memory_space<vmem>>, %arg5: memref<1x32xf32, #tpu.memory_space<vmem>>, %arg6: memref<32x16xbf16, #tpu.memory_space<vmem>>, %arg7: memref<1x16xf32, #tpu.memory_space<vmem>>, %arg8: memref<16x2xbf16, #tpu.memory_space<vmem>>, %arg9: memref<1x2xf32, #tpu.memory_space<vmem>>, %arg10: memref<8x2xf32, #tpu.memory_space<vmem>>) attributes {dimension_semantics = [#tpu.dimension_semantics<parallel>], iteration_bounds = array<i64: 1>, scalar_prefetch = 0 : i64, scratch_operands = 0 : i64, tpu.core_type = #tpu.core_type<tc>, window_params = [{transform_indices = @transform_0, window_bounds = array<i64: 8, 2>}, {transform_indices = @transform_1, window_bounds = array<i64: 8, 4>}, {pipeline_mode = #tpu.pipeline_mode<synchronous>, transform_indices = @transform_2, window_bounds = array<i64: 17, 32>}, {pipeline_mode = #tpu.pipeline_mode<synchronous>, transform_indices = @transform_3, window_bounds = array<i64: 4, 32>}, {pipeline_mode = #tpu.pipeline_mode<synchronous>, transform_indices = @transform_4, window_bounds = array<i64: 1, 32>}, {pipeline_mode = #tpu.pipeline_mode<synchronous>, transform_indices = @transform_5, window_bounds = array<i64: 32, 16>}, {pipeline_mode = #tpu.pipeline_mode<synchronous>, transform_indices = @transform_6, window_bounds = array<i64: 1, 16>}, {pipeline_mode = #tpu.pipeline_mode<synchronous>, transform_indices = @transform_7, window_bounds = array<i64: 16, 2>}, {pipeline_mode = #tpu.pipeline_mode<synchronous>, transform_indices = @transform_8, window_bounds = array<i64: 1, 2>}, {transform_indices = @transform_9, window_bounds = array<i64: 8, 2>}]} {
    %0 = tpu.iota {dimensions = array<i32: 1>} : vector<8x17xi32>
    %cst = arith.constant 0.000000e+00 : f32
    %1 = vector.broadcast %cst : f32 to vector<8x17xf32>
    %c0 = arith.constant 0 : index
    %c0_0 = arith.constant 0 : index
    %2 = vector.load %arg1[%c0, %c0_0] : memref<8x2xi32, #tpu.memory_space<vmem>>, vector<8x1xi32>
    %3 = vector.broadcast %2 : vector<8x1xi32> to vector<8x17xi32>
    %4 = arith.cmpi eq, %0, %3 : vector<8x17xi32>
    %5 = arith.extui %4 : vector<8x17xi1> to vector<8x17xi32>
    %6 = arith.sitofp %5 : vector<8x17xi32> to vector<8x17xf32>
    %7 = arith.addf %1, %6 : vector<8x17xf32>
    %c0_1 = arith.constant 0 : index
    %c1 = arith.constant 1 : index
    %8 = vector.load %arg1[%c0_1, %c1] : memref<8x2xi32, #tpu.memory_space<vmem>>, vector<8x1xi32>
    %9 = vector.broadcast %8 : vector<8x1xi32> to vector<8x17xi32>
    %10 = arith.cmpi eq, %0, %9 : vector<8x17xi32>
    %11 = arith.extui %10 : vector<8x17xi1> to vector<8x17xi32>
    %12 = arith.sitofp %11 : vector<8x17xi32> to vector<8x17xf32>
    %13 = arith.addf %7, %12 : vector<8x17xf32>
    %14 = arith.truncf %13 : vector<8x17xf32> to vector<8x17xbf16>
    %c0_2 = arith.constant 0 : index
    %c0_3 = arith.constant 0 : index
    %15 = vector.load %arg3[%c0_2, %c0_3] : memref<17x32xbf16, #tpu.memory_space<vmem>>, vector<17x32xbf16>
    %cst_4 = arith.constant dense<0.000000e+00> : vector<8x32xf32>
    %16 = tpu.matmul %14, %15, %cst_4 {dimension_numbers = #tpu.dot_dimension_numbers<[1], [0], [0], [1], [0, 0, 1, 1], [], []>} : vector<8x17xbf16>, vector<17x32xbf16>, vector<8x32xf32> -> vector<8x32xf32>
    %c0_5 = arith.constant 0 : index
    %c0_6 = arith.constant 0 : index
    %17 = vector.load %arg2[%c0_5, %c0_6] : memref<8x4xf32, #tpu.memory_space<vmem>>, vector<8x4xf32>
    %18 = arith.truncf %17 : vector<8x4xf32> to vector<8x4xbf16>
    %c0_7 = arith.constant 0 : index
    %c0_8 = arith.constant 0 : index
    %19 = vector.load %arg4[%c0_7, %c0_8] : memref<4x32xbf16, #tpu.memory_space<vmem>>, vector<4x32xbf16>
    %cst_9 = arith.constant dense<0.000000e+00> : vector<8x32xf32>
    %20 = tpu.matmul %18, %19, %cst_9 {dimension_numbers = #tpu.dot_dimension_numbers<[1], [0], [0], [1], [0, 0, 1, 1], [], []>} : vector<8x4xbf16>, vector<4x32xbf16>, vector<8x32xf32> -> vector<8x32xf32>
    %21 = arith.addf %16, %20 : vector<8x32xf32>
    %c0_10 = arith.constant 0 : index
    %c0_11 = arith.constant 0 : index
    %22 = vector.load %arg5[%c0_10, %c0_11] : memref<1x32xf32, #tpu.memory_space<vmem>>, vector<1x32xf32>
    %23 = vector.broadcast %22 : vector<1x32xf32> to vector<8x32xf32>
    %24 = arith.addf %21, %23 : vector<8x32xf32>
    %cst_12 = arith.constant 0.000000e+00 : f32
    %25 = vector.broadcast %cst_12 : f32 to vector<8x32xf32>
    %26 = arith.maximumf %24, %25 : vector<8x32xf32>
    %27 = arith.truncf %26 : vector<8x32xf32> to vector<8x32xbf16>
    %c0_13 = arith.constant 0 : index
    %c0_14 = arith.constant 0 : index
    %28 = vector.load %arg6[%c0_13, %c0_14] : memref<32x16xbf16, #tpu.memory_space<vmem>>, vector<32x16xbf16>
    %cst_15 = arith.constant dense<0.000000e+00> : vector<8x16xf32>
    %29 = tpu.matmul %27, %28, %cst_15 {dimension_numbers = #tpu.dot_dimension_numbers<[1], [0], [0], [1], [0, 0, 1, 1], [], []>} : vector<8x32xbf16>, vector<32x16xbf16>, vector<8x16xf32> -> vector<8x16xf32>
    %c0_16 = arith.constant 0 : index
    %c0_17 = arith.constant 0 : index
    %30 = vector.load %arg7[%c0_16, %c0_17] : memref<1x16xf32, #tpu.memory_space<vmem>>, vector<1x16xf32>
    %31 = vector.broadcast %30 : vector<1x16xf32> to vector<8x16xf32>
    %32 = arith.addf %29, %31 : vector<8x16xf32>
    %cst_18 = arith.constant 0.000000e+00 : f32
    %33 = vector.broadcast %cst_18 : f32 to vector<8x16xf32>
    %34 = arith.maximumf %32, %33 : vector<8x16xf32>
    %35 = arith.truncf %34 : vector<8x16xf32> to vector<8x16xbf16>
    %c0_19 = arith.constant 0 : index
    %c0_20 = arith.constant 0 : index
    %36 = vector.load %arg8[%c0_19, %c0_20] : memref<16x2xbf16, #tpu.memory_space<vmem>>, vector<16x2xbf16>
    %cst_21 = arith.constant dense<0.000000e+00> : vector<8x2xf32>
    %37 = tpu.matmul %35, %36, %cst_21 {dimension_numbers = #tpu.dot_dimension_numbers<[1], [0], [0], [1], [0, 0, 1, 1], [], []>} : vector<8x16xbf16>, vector<16x2xbf16>, vector<8x2xf32> -> vector<8x2xf32>
    %c0_22 = arith.constant 0 : index
    %c0_23 = arith.constant 0 : index
    %38 = vector.load %arg9[%c0_22, %c0_23] : memref<1x2xf32, #tpu.memory_space<vmem>>, vector<1x2xf32>
    %39 = vector.broadcast %38 : vector<1x2xf32> to vector<8x2xf32>
    %40 = arith.addf %37, %39 : vector<8x2xf32>
    %c0_24 = arith.constant 0 : index
    %c0_25 = arith.constant 0 : index
    %41 = vector.load %arg10[%c0_24, %c0_25] : memref<8x2xf32, #tpu.memory_space<vmem>>, vector<8x2xf32>
    tpu.vector_store %arg10[%c0_24, %c0_25], %40 {strides = array<i32>} : memref<8x2xf32, #tpu.memory_space<vmem>>, vector<8x2xf32>,
    return
  }
  func.func @transform_0(%arg0: i32) -> (i32, i32) {
    %c0_i32 = arith.constant 0 : i32
    %c0_i32_0 = arith.constant 0 : i32
    return %arg0, %c0_i32 : i32, i32
  }
  func.func @transform_1(%arg0: i32) -> (i32, i32) {
    %c0_i32 = arith.constant 0 : i32
    %c0_i32_0 = arith.constant 0 : i32
    return %arg0, %c0_i32 : i32, i32
  }
  func.func @transform_2(%arg0: i32) -> (i32, i32) {
    %c0_i32 = arith.constant 0 : i32
    %c0_i32_0 = arith.constant 0 : i32
    %c0_i32_1 = arith.constant 0 : i32
    return %c0_i32, %c0_i32_0 : i32, i32
  }
  func.func @transform_3(%arg0: i32) -> (i32, i32) {
    %c0_i32 = arith.constant 0 : i32
    %c0_i32_0 = arith.constant 0 : i32
    %c0_i32_1 = arith.constant 0 : i32
    return %c0_i32, %c0_i32_0 : i32, i32
  }
  func.func @transform_4(%arg0: i32) -> (i32, i32) {
    %c0_i32 = arith.constant 0 : i32
    %c0_i32_0 = arith.constant 0 : i32
    %c0_i32_1 = arith.constant 0 : i32
    return %c0_i32, %c0_i32_0 : i32, i32
  }
  func.func @transform_5(%arg0: i32) -> (i32, i32) {
    %c0_i32 = arith.constant 0 : i32
    %c0_i32_0 = arith.constant 0 : i32
    %c0_i32_1 = arith.constant 0 : i32
    return %c0_i32, %c0_i32_0 : i32, i32
  }
  func.func @transform_6(%arg0: i32) -> (i32, i32) {
    %c0_i32 = arith.constant 0 : i32
    %c0_i32_0 = arith.constant 0 : i32
    %c0_i32_1 = arith.constant 0 : i32
    return %c0_i32, %c0_i32_0 : i32, i32
  }
  func.func @transform_7(%arg0: i32) -> (i32, i32) {
    %c0_i32 = arith.constant 0 : i32
    %c0_i32_0 = arith.constant 0 : i32
    %c0_i32_1 = arith.constant 0 : i32
    return %c0_i32, %c0_i32_0 : i32, i32
  }
  func.func @transform_8(%arg0: i32) -> (i32, i32) {
    %c0_i32 = arith.constant 0 : i32
    %c0_i32_0 = arith.constant 0 : i32
    %c0_i32_1 = arith.constant 0 : i32
    return %c0_i32, %c0_i32_0 : i32, i32
  }
  func.func @transform_9(%arg0: i32) -> (i32, i32) {
    %c0_i32 = arith.constant 0 : i32
    %c0_i32_0 = arith.constant 0 : i32
    return %arg0, %c0_i32 : i32, i32
  }
}

</mosaic_0001>

<bundles_post_ra>
// kernel: tpu_custom_call.1
= control target key start
LH: loop header
LB: loop body
LE: loop exit
PB: predicated region body
PF: predicated region fallthrough
CT: control target
= control target key end

     0   :  { %vm118_vm0 = vcmask 1040384   ;;  %v371_v0 = vmov 0   ;;  %v372_v4 = vmov 0.0   ;;  %vm61_vm1 = vcmask 1041408   ;;  %s465_s2 = inlined_call_operand.vmem [shape: bf16[17,32], index: 2, kind: input, shape index: {}]   ;;  %s466_s0 = inlined_call_operand.vmem [shape: s32[8,2], index: 0, kind: input, shape index: {}]   ;;  %s467_s3 = inlined_call_operand.vmem [shape: bf16[4,32], index: 3, kind: input, shape index: {}]   ;;  %s468_s1 = inlined_call_operand.vmem [shape: f32[8,4], index: 1, kind: input, shape index: {}]   ;;  %s469_s5 = inlined_call_operand.vmem [shape: bf16[32,16], index: 5, kind: input, shape index: {}]   ;;  %s470_s7 = inlined_call_operand.vmem [shape: bf16[16,2], index: 7, kind: input, shape index: {}]   ;;  %s471_s4 = inlined_call_operand.vmem [shape: f32[1,32], index: 4, kind: input, shape index: {}]   ;;  %s472_s6 = inlined_call_operand.vmem [shape: f32[1,16], index: 6, kind: input, shape index: {}]   ;;  %s473_s8 = inlined_call_operand.vmem [shape: f32[1,2], index: 8, kind: input, shape index: {}]   ;;  %s474_s9 = inlined_call_operand.vmem [shape: f32[8,2], index: 9, kind: output, shape index: {}]  }
   0x1   :  { %364 = vset.pattern.permute.xlu0 %v371_v0  ;;  %v366_v1 = vld [vmem:[%s465_s2 + $0x8] ss:$0 sps:$4 sm:$0x11]   ;;  %v35_v2 = vld [vmem:[%s466_s0] sm:$0xff]  ;;  %v120_v3 = vsel %vm118_vm0, 65535, %v371_v0  ;;  %338 = vmatprep.subr.bf16.mxu1 %v372_v4  ;;  %v373_v8 = vmov 1   ;;  %v33_v12 = vlaneseq }
   0x2   :  { %37 = vperm.xlu0 %364, %v35_v2   ;;  %332 = vmatprep.subr.bf16.mxu0 %v372_v4  ;;  %v367_v5 = vld [vmem:[%s465_s2] sm:$0xff]   ;;  %v122_v6 = vand.u32 %v366_v1, %v120_v3  ;;  %vm374_vm2 = vmmov 0   ;;  %vm57_vm3 = vcmask 31744   ;;  %vm114_vm6 = vcmask 138240   ;;  %v369_v25 = vld [vmem:[%s469_s5 + $0x8] sm:$0xff]  }
   0x3   :  { %339 = vmatpush3.bf16.msra.mxu1 %v367_v5  ;;  %v56_v7 = vld [vmem:[%s467_s3] sm:$0x3]  ;;  %334 = vmatprep.mubr.msk.bf16.mxu0 %vm374_vm2, %v372_v4  ;;  %v34_v13 = vand.u32 127, %v33_v12  ;;  %vm197_vm7 = vcmask 261120   ;;  %vm258_vm8 = vcmask 130048   ;;  %vm302_vm9 = vcmask 15360  }
   0x4   :  { %v63_v9 = vsel %vm61_vm1, %v56_v7, 0  ;;  %340 = vmatprep.subr.bf16.mxu1 %v372_v4  ;;  %v54_v10 = vld [vmem:[%s468_s1] sm:$0xff]  ;;  %342 = vmatprep.mubr.msk.bf16.mxu1 %vm374_vm2, %v372_v4 }
   0x5   :  { %333 = vmatpush3.bf16.msra.mxu0 %v63_v9  ;;  %v55_v11 = vpack.c.bf16 %v54_v10, %v54_v10  ;;  %v368_v24 = vld [vmem:[%s469_s5] sm:$0xff]  }
   0x6   :  { %365 = vset.pattern.permute.xlu0 %v373_v8  ;;  %346 = vmatprep.subr.bf16.mxu0 %v372_v4  ;;  %v370_v26 = vld [vmem:[%s470_s7] sm:$0xff]  }
   0x7   :  { %44 = vperm.xlu0 %365, %v35_v2   ;;  %341 = vmatpush3.bf16.msra.mxu1 %v122_v6  ;;  %v314_v28 = vld [vmem:[%s471_s4] ss:$0 sm:$0xff] }
   0x8   :  { %335 = vmatmul.mubr.msk.bf16.vlgmr.msra.gmra.mrb[0].mxu0 %vm57_vm3, %v55_v11  ;;  %354 = vmatprep.subr.bf16.mxu1 %v372_v4  ;;  %v315_v36 = vld [vmem:[%s472_s6] ss:$0 sm:$0xff] }
   0x9   :  { %350 = vmatprep.mubr.msk.bf16.mxu0 %vm374_vm2, %v372_v4  ;;  %347 = vmatpush3.bf16.msra.mxu0 %v368_v24  ;;  %v319_v44 = vld [vmem:[%s473_s8] ss:$0 sm:$0xff] }
   0xa   :  { %348 = vmatprep.subr.bf16.mxu0 %v372_v4 }
   0xd   :  { %349 = vmatpush3.bf16.msra.mxu0 %v369_v25 }
  0x81   :  { %v38_v14 = vpop.permute.xlu0 %37 }
  0x82   :  { %vm39_vm4 = vcmp.eq.s32.totalorder %v34_v13, %v38_v14 }
  0x83   :  { %v308_v16 = vsel %vm39_vm4, 1.0, %v372_v4 }
  0x86   :  { %v45_v15 = vpop.permute.xlu0 %44 }
  0x87   :  { %vm46_vm5 = vcmp.eq.s32.totalorder %v34_v13, %v45_v15 }
  0x88   :  { %v309_v17 = vsel %vm46_vm5, 1.0, %v372_v4 }
  0x89   :  { %v49_v18 = vadd.f32 %v309_v17, %v308_v16 }
  0x8b   :  { %v50_v19 = vpack.c.bf16 %v49_v18, %v49_v18 }
  0x8d   :  { %343 = vmatmul.mubr.msk.bf16.vlgmr.msra.gmra.mrb[0].mxu1 %vm114_vm6, %v50_v19 }
  0x8e   :  { %356 = vmatprep.mubr.msk.bf16.mxu1 %vm374_vm2, %v372_v4  ;;  %355 = vmatpush3.bf16.msra.mxu1 %v370_v26 }
  0xdb   :  { %v99_v20 = vpop.f32.mrb[0].mxu0 }
  0xdc   :  { %v336_v21 = vpop.f32.mrb[1].mxu0 }
  0xdd   :  { %v102_v22 = vpop.f32.mrb[2].mxu0 }
  0xde   :  { %v337_v23 = vpop.f32.mrb[3].mxu0 }
 0x160   :  { %v158_v27 = vpop.f32.mrb[0].mxu1 }
 0x161   :  { %v159_v29 = vadd.f32 %v158_v27, %v99_v20  ;;  %v344_v30 = vpop.f32.mrb[1].mxu1 }
 0x162   :  { %v161_v31 = vpop.f32.mrb[2].mxu1 }
 0x163   :  { %v171_v32 = vadd.f32 %v314_v28, %v159_v29  ;;  %v345_v33 = vpop.f32.mrb[3].mxu1 }
 0x165   :  { %v172_v34 = vmax.f32 %v171_v32, 0.0 }
 0x167   :  { %v173_v35 = vpack.c.bf16 %v172_v34, %v172_v34 }
 0x169   :  { %351 = vmatmul.mubr.msk.bf16.vlgmr.msra.gmra.mrb[4].mxu0 %vm197_vm7, %v173_v35 }
 0x23c   :  { %v235_v37 = vpop.f32.mrb[4].mxu0 }
 0x23d   :  { %v236_v38 = vadd.f32 %v315_v36, %v235_v37  ;;  %v352_v39 = vpop.f32.mrb[5].mxu0 }
 0x23e   :  { %v238_v40 = vpop.f32.mrb[6].mxu0 }
 0x23f   :  { %v241_v41 = vmax.f32 %v236_v38, 0.0  ;;  %v353_v42 = vpop.f32.mrb[7].mxu0 }
 0x241   :  { %v242_v43 = vpack.c.bf16 %v241_v41, %v241_v41 }
 0x243   :  { %357 = vmatmul.mubr.msk.bf16.vlgmr.msra.gmra.mrb[4].mxu1 %vm258_vm8, %v242_v43 }
 0x316   :  { %v296_v45 = vpop.f32.mrb[4].mxu1 }
 0x317   :  { %v297_v46 = vadd.f32 %v319_v44, %v296_v45  ;;  %v358_v47 = vpop.f32.mrb[5].mxu1 }
 0x318   :  { %v299_v48 = vpop.f32.mrb[6].mxu1 }
 0x319   :  { %303 = vst.msk [vmem:[%s474_s9] sm:$0xff] %vm302_vm9, %v297_v46  ;;  %v359_v49 = vpop.f32.mrb[7].mxu1 }

</bundles_post_ra>
